<compile_context>
chip_gen: v7x
topology: tpu7x:2x2x1
jax: 0.10.0
libtpu: 0.0.40
codegen_flags: <defaults>
</compile_context>

<pallas_src>
import functools

import jax
import jax.numpy as jnp
from jax.experimental import pallas as pl
from jax.experimental.pallas import tpu as pltpu


def _round_up(x, m):
    return (x + m - 1) // m * m


def _pick_tile_h(oh, ow):
    """Smallest divisor of OH whose matmul M-dim (TH*OW) is >= 128."""
    for t_h in range(1, oh + 1):
        if oh % t_h == 0 and t_h * ow >= 128:
            return t_h
    return oh


def _ll_conv2d_kernel(x_ref, w_ref, b_ref, o_ref, col_ref, *,
                      fh, fw, sh, sw, th, ow, cin):
    """One (batch, OH-tile, Cout-tile) grid step.

    x_ref:   (1, HP, WP, Cin)    whole zero-padded NHWC image (resident across
                                 the row-tile / Cout-tile axes)
    w_ref:   (fh*fw*Cin, TCo)    im2col weight matrix tile
    b_ref:   (1, TCo)            effective bias tile
    o_ref:   (1, TH, OW, TCo)    NHWC output tile (TCo is a multiple of 128)
    col_ref: (TH*OW, fh*fw*Cin)  VMEM im2col scratch, built once per (b, t)
    """
    t = pl.program_id(1)
    co = pl.program_id(2)
    m = th * ow
    ih_win = (th - 1) * sh + fh

    # Build the im2col matrix only once per row tile; reused across Cout tiles.
    @pl.when(co == 0)
    def _build_im2col():
        row0 = pl.multiple_of(t * (th * sh), th * sh)
        x_win = x_ref[:, pl.ds(row0, ih_win), :, :]        # (1, ih_win, WP, Cin)
        taps = []
        for kh in range(fh):
            for kw in range(fw):
                # TODO(synk): stride > 1 lowers to strided in-register slices
                # (XLU); phase-split on the host for production strided layers.
                slab = x_win[0,
                             kh:kh + (th - 1) * sh + 1:sh,
                             kw:kw + (ow - 1) * sw + 1:sw,
                             :]                            # (th, ow, cin)
                taps.append(slab.reshape(m, cin))
        col_ref[...] = jnp.concatenate(taps, axis=-1).astype(col_ref.dtype)

    # Single lane-dense MXU matmul; effective bias folded into the f32 epilogue.
    out = jnp.dot(col_ref[...], w_ref[...], preferred_element_type=jnp.float32)
    out = out + b_ref[...].astype(jnp.float32)             # (m, TCo) + (1, TCo)
    o_ref[0] = out.reshape(th, ow, -1).astype(o_ref.dtype)


def ll_conv2d(x, weight, bias=None, *, stride=(1, 1), padding=(0, 0),
              neuron_type="QIF", steps=1, realize_time=1):
    """LLConv2d forward. x: (N, Cin, H, W) NCHW; weight: (Cout, Cin, FH, FW)."""
    n, cin, h, w = x.shape
    cout, cin_w, fh, fw = weight.shape
    assert cin_w == cin, "channel mismatch"
    sh, sw = stride
    ph, pw = padding
    oh = (h - fh + 2 * ph) // sh + 1
    ow = (w - fw + 2 * pw) // sw + 1

    # Effective bias implementing the module's branch logic.
    if bias is None:
        eff_bias = jnp.zeros((cout,), x.dtype)
    elif neuron_type == "IF":
        eff_bias = bias
    elif realize_time > 0:
        eff_bias = bias / float(steps)
    else:
        eff_bias = jnp.zeros((cout,), bias.dtype)

    # Host-side layout prep (single fused pad+transpose pass). See TODO above
    # about fusing / removing this round trip.
    x_nhwc = jnp.transpose(x, (0, 2, 3, 1))
    x_pad = jnp.pad(x_nhwc, ((0, 0), (ph, ph), (pw, pw), (0, 0)))
    hp, wp = h + 2 * ph, w + 2 * pw

    # im2col weights: (Cout, Cin, FH, FW) -> (FH*FW*Cin, CoutP) with Cout
    # zero-padded to a multiple of 128 (lane-dense matmul result & stores).
    k_dim = fh * fw * cin
    cout_p = _round_up(cout, 128)
    w_mat = jnp.transpose(weight, (2, 3, 1, 0)).reshape(k_dim, cout)
    w_mat = jnp.pad(w_mat, ((0, 0), (0, cout_p - cout))).astype(x.dtype)
    b_mat = jnp.pad(eff_bias.reshape(1, cout),
                    ((0, 0), (0, cout_p - cout))).astype(jnp.float32)

    # Tiling.
    th = _pick_tile_h(oh, ow)
    n_th = oh // th
    t_co = 256 if cout_p % 256 == 0 else 128
    n_co = cout_p // t_co
    m = th * ow

    kernel = functools.partial(_ll_conv2d_kernel, fh=fh, fw=fw, sh=sh, sw=sw,
                               th=th, ow=ow, cin=cin)

    # VMEM budget: padded (sublane/lane-rounded) footprints, double-buffered
    # pipelined operands, single-buffered scratch, clipped to a per-generation
    # cap (~48 MiB on v7x, ~96 MiB on v5e/v6e).
    def blk_bytes(shape, dtype):
        item = jnp.dtype(dtype).itemsize
        dims = list(shape)
        dims[-1] = _round_up(dims[-1], 128)
        if len(dims) >= 2:
            dims[-2] = _round_up(dims[-2], 8 * max(1, 4 // item))
        nelem = 1
        for d in dims:
            nelem *= d
        return nelem * item

    need = (2 * (blk_bytes((1, hp, wp, cin), x.dtype)
                 + blk_bytes((k_dim, t_co), x.dtype)
                 + blk_bytes((1, t_co), jnp.float32)
                 + blk_bytes((1, th, ow, t_co), x.dtype))
            + blk_bytes((m, k_dim), x.dtype)
            + (2 << 20))
    try:
        phys_vmem = int(getattr(pltpu.get_tpu_info(), "vmem_capacity_bytes",
                                64 << 20))
    except Exception:
        phys_vmem = 64 << 20
    cap = min((phys_vmem * 3) // 4, 100 << 20)
    vmem_limit = int(min(max(need, 16 << 20), cap))

    out_nhwc = pl.pallas_call(
        kernel,
        out_shape=jax.ShapeDtypeStruct((n, oh, ow, cout_p), x.dtype),
        grid_spec=pltpu.PrefetchScalarGridSpec(
            num_scalar_prefetch=0,
            grid=(n, n_th, n_co),
            in_specs=[
                # Whole padded image: DMA'd once per batch element, kept
                # resident (block index constant) across the t / co axes.
                pl.BlockSpec((1, hp, wp, cin), lambda b, t, c: (b, 0, 0, 0)),
                pl.BlockSpec((k_dim, t_co), lambda b, t, c: (0, c)),
                pl.BlockSpec((1, t_co), lambda b, t, c: (0, c)),
            ],
            out_specs=pl.BlockSpec((1, th, ow, t_co),
                                   lambda b, t, c: (b, t, 0, c)),
            scratch_shapes=[pltpu.VMEM((m, k_dim), x.dtype)],
        ),
        compiler_params=pltpu.CompilerParams(
            dimension_semantics=("parallel", "parallel", "arbitrary"),
            vmem_limit_bytes=vmem_limit,
        ),
    )(x_pad, w_mat, b_mat)

    # Drop the Cout padding and return NCHW (single fused slice+transpose).
    return jnp.transpose(out_nhwc[..., :cout], (0, 3, 1, 2))


def _reference(x, weight, bias, *, stride, padding, neuron_type, steps,
               realize_time):
    """Mirrors the PyTorch LLConv2d.forward branch structure exactly."""
    out = jax.lax.conv_general_dilated(
        x, weight, window_strides=stride,
        padding=((padding[0], padding[0]), (padding[1], padding[1])),
        dimension_numbers=("NCHW", "OIHW", "NCHW"),
        precision=jax.lax.Precision.HIGHEST,
        preferred_element_type=jnp.float32).astype(x.dtype)
    if bias is not None:
        out = out + bias[None, :, None, None]          # self.conv(x) includes bias
    if neuron_type == "IF" or bias is None:
        return out
    out = out - bias[None, :, None, None]
    if realize_time > 0:
        out = out + bias[None, :, None, None] / float(steps)
    return out


if __name__ == "__main__":
    key = jax.random.PRNGKey(0)
    kx, kw_, kb = jax.random.split(key, 3)

    # batch=2, Cin=4, Cout=4, 16x16 spatial, 3x3 conv, stride 1, pad 1.
    # With OH=OW=16 the row-tile picker chooses TH=8 -> grid (2, 2, 1).
    N, Cin, H, W = 2, 4, 16, 16
    Cout, FH, FW = 4, 3, 3
    stride, padding = (1, 1), (1, 1)

    # Small-integer inputs keep the computation exact regardless of MXU precision.
    x = jax.random.randint(kx, (N, Cin, H, W), -2, 3).astype(jnp.float32)
    weight = jax.random.randint(kw_, (Cout, Cin, FH, FW), -2, 3).astype(jnp.float32)
    bias = jax.random.randint(kb, (Cout,), -2, 3).astype(jnp.float32) * 0.5

    cases = [
        dict(neuron_type="QIF", steps=1, realize_time=1, bias=bias),  # first call
        dict(neuron_type="QIF", steps=1, realize_time=0, bias=bias),  # later calls
        dict(neuron_type="IF", steps=1, realize_time=1, bias=bias),   # IF branch
        dict(neuron_type="QIF", steps=1, realize_time=1, bias=None),  # no bias
    ]

    for c in cases:
        out = ll_conv2d(x, weight, c["bias"], stride=stride, padding=padding,
                        neuron_type=c["neuron_type"], steps=c["steps"],
                        realize_time=c["realize_time"])
        out = jax.block_until_ready(out)
        ref = _reference(x, weight, c["bias"], stride=stride, padding=padding,
                         neuron_type=c["neuron_type"], steps=c["steps"],
                         realize_time=c["realize_time"])
        assert out.shape == ref.shape, f"shape mismatch {out.shape} vs {ref.shape}"
        assert jnp.allclose(out, ref, atol=1e-4, rtol=1e-4), \
            f"mismatch for case {c['neuron_type']}/rt={c['realize_time']}"

    print("KERNEL_OK")
</pallas_src>

<mosaic_0001>
module attributes {stable_mosaic.version = 11 : i64} {
  func.func @_ll_conv2d_kernel(%arg0: i32, %arg1: i32, %arg2: i32, %arg3: memref<1x18x18x4xf32, #tpu.memory_space<vmem>>, %arg4: memref<36x128xf32, #tpu.memory_space<vmem>>, %arg5: memref<1x128xf32, #tpu.memory_space<vmem>>, %arg6: memref<1x8x16x128xf32, #tpu.memory_space<vmem>>, %arg7: memref<128x36xf32, #tpu.memory_space<vmem>>) attributes {dimension_semantics = [#tpu.dimension_semantics<parallel>, #tpu.dimension_semantics<parallel>, #tpu.dimension_semantics<arbitrary>], iteration_bounds = array<i64: 2, 2, 1>, scalar_prefetch = 0 : i64, scratch_operands = 1 : i64, tpu.core_type = #tpu.core_type<tc>, window_params = [{transform_indices = @transform_0, window_bounds = array<i64: 1, 18, 18, 4>}, {transform_indices = @transform_1, window_bounds = array<i64: 36, 128>}, {transform_indices = @transform_2, window_bounds = array<i64: 1, 128>}, {transform_indices = @transform_3, window_bounds = array<i64: 1, 8, 16, 128>}]} {
    %c0_i32 = arith.constant 0 : i32
    %0 = arith.cmpi eq, %arg2, %c0_i32 : i32
    %1 = arith.extui %0 : i1 to i32
    %c0_i32_0 = arith.constant 0 : i32
    %2 = arith.cmpi ne, %1, %c0_i32_0 : i32
    scf.if %2 {
      %c8_i32 = arith.constant 8 : i32
      %13 = arith.muli %arg1, %c8_i32 : i32
      %14 = tpu.assume_multiple %13, 8 : i32
      %c0_10 = arith.constant 0 : index
      %15 = arith.index_cast %14 : i32 to index
      %c0_11 = arith.constant 0 : index
      %c0_12 = arith.constant 0 : index
      %16 = vector.load %arg3[%c0_10, %15, %c0_11, %c0_12] : memref<1x18x18x4xf32, #tpu.memory_space<vmem>>, vector<1x10x18x4xf32>
      %17 = vector.extract_strided_slice %16 {offsets = [0, 0, 0, 0], sizes = [1, 8, 16, 4], strides = [1, 1, 1, 1]} : vector<1x10x18x4xf32> to vector<1x8x16x4xf32>
      %18 = vector.shape_cast %17 : vector<1x8x16x4xf32> to vector<8x16x4xf32>
      %19 = vector.shape_cast %18 : vector<8x16x4xf32> to vector<128x4xf32>
      %20 = vector.extract_strided_slice %16 {offsets = [0, 0, 1, 0], sizes = [1, 8, 16, 4], strides = [1, 1, 1, 1]} : vector<1x10x18x4xf32> to vector<1x8x16x4xf32>
      %21 = vector.shape_cast %20 : vector<1x8x16x4xf32> to vector<8x16x4xf32>
      %22 = vector.shape_cast %21 : vector<8x16x4xf32> to vector<128x4xf32>
      %23 = vector.extract_strided_slice %16 {offsets = [0, 0, 2, 0], sizes = [1, 8, 16, 4], strides = [1, 1, 1, 1]} : vector<1x10x18x4xf32> to vector<1x8x16x4xf32>
      %24 = vector.shape_cast %23 : vector<1x8x16x4xf32> to vector<8x16x4xf32>
      %25 = vector.shape_cast %24 : vector<8x16x4xf32> to vector<128x4xf32>
      %26 = vector.extract_strided_slice %16 {offsets = [0, 1, 0, 0], sizes = [1, 8, 16, 4], strides = [1, 1, 1, 1]} : vector<1x10x18x4xf32> to vector<1x8x16x4xf32>
      %27 = vector.shape_cast %26 : vector<1x8x16x4xf32> to vector<8x16x4xf32>
      %28 = vector.shape_cast %27 : vector<8x16x4xf32> to vector<128x4xf32>
      %29 = vector.extract_strided_slice %16 {offsets = [0, 1, 1, 0], sizes = [1, 8, 16, 4], strides = [1, 1, 1, 1]} : vector<1x10x18x4xf32> to vector<1x8x16x4xf32>
      %30 = vector.shape_cast %29 : vector<1x8x16x4xf32> to vector<8x16x4xf32>
      %31 = vector.shape_cast %30 : vector<8x16x4xf32> to vector<128x4xf32>
      %32 = vector.extract_strided_slice %16 {offsets = [0, 1, 2, 0], sizes = [1, 8, 16, 4], strides = [1, 1, 1, 1]} : vector<1x10x18x4xf32> to vector<1x8x16x4xf32>
      %33 = vector.shape_cast %32 : vector<1x8x16x4xf32> to vector<8x16x4xf32>
      %34 = vector.shape_cast %33 : vector<8x16x4xf32> to vector<128x4xf32>
      %35 = vector.extract_strided_slice %16 {offsets = [0, 2, 0, 0], sizes = [1, 8, 16, 4], strides = [1, 1, 1, 1]} : vector<1x10x18x4xf32> to vector<1x8x16x4xf32>
      %36 = vector.shape_cast %35 : vector<1x8x16x4xf32> to vector<8x16x4xf32>
      %37 = vector.shape_cast %36 : vector<8x16x4xf32> to vector<128x4xf32>
      %38 = vector.extract_strided_slice %16 {offsets = [0, 2, 1, 0], sizes = [1, 8, 16, 4], strides = [1, 1, 1, 1]} : vector<1x10x18x4xf32> to vector<1x8x16x4xf32>
      %39 = vector.shape_cast %38 : vector<1x8x16x4xf32> to vector<8x16x4xf32>
      %40 = vector.shape_cast %39 : vector<8x16x4xf32> to vector<128x4xf32>
      %41 = vector.extract_strided_slice %16 {offsets = [0, 2, 2, 0], sizes = [1, 8, 16, 4], strides = [1, 1, 1, 1]} : vector<1x10x18x4xf32> to vector<1x8x16x4xf32>
      %42 = vector.shape_cast %41 : vector<1x8x16x4xf32> to vector<8x16x4xf32>
      %43 = vector.shape_cast %42 : vector<8x16x4xf32> to vector<128x4xf32>
      %44 = tpu.concatenate %19, %22, %25, %28, %31, %34, %37, %40, %43 in 1 : vector<128x4xf32>, vector<128x4xf32>, vector<128x4xf32>, vector<128x4xf32>, vector<128x4xf32>, vector<128x4xf32>, vector<128x4xf32>, vector<128x4xf32>, vector<128x4xf32> -> vector<128x36xf32>
      %c0_13 = arith.constant 0 : index
      %c0_14 = arith.constant 0 : index
      %45 = vector.load %arg7[%c0_13, %c0_14] : memref<128x36xf32, #tpu.memory_space<vmem>>, vector<128x36xf32>
      tpu.vector_store %arg7[%c0_13, %c0_14], %44 {strides = array<i32>} : memref<128x36xf32, #tpu.memory_space<vmem>>, vector<128x36xf32>,
    } else {
    }
    %c0 = arith.constant 0 : index
    %c0_1 = arith.constant 0 : index
    %3 = vector.load %arg7[%c0, %c0_1] : memref<128x36xf32, #tpu.memory_space<vmem>>, vector<128x36xf32>
    %c0_2 = arith.constant 0 : index
    %c0_3 = arith.constant 0 : index
    %4 = vector.load %arg4[%c0_2, %c0_3] : memref<36x128xf32, #tpu.memory_space<vmem>>, vector<36x128xf32>
    %cst = arith.constant dense<0.000000e+00> : vector<128x128xf32>
    %5 = tpu.matmul %3, %4, %cst {dimension_numbers = #tpu.dot_dimension_numbers<[1], [0], [0], [1], [0, 0, 1, 1], [], []>} : vector<128x36xf32>, vector<36x128xf32>, vector<128x128xf32> -> vector<128x128xf32>
    %c0_4 = arith.constant 0 : index
    %c0_5 = arith.constant 0 : index
    %6 = vector.load %arg5[%c0_4, %c0_5] : memref<1x128xf32, #tpu.memory_space<vmem>>, vector<1x128xf32>
    %7 = vector.broadcast %6 : vector<1x128xf32> to vector<128x128xf32>
    %8 = arith.addf %5, %7 : vector<128x128xf32>
    %9 = vector.shape_cast %8 : vector<128x128xf32> to vector<8x16x128xf32>
    %c0_6 = arith.constant 0 : index
    %c0_7 = arith.constant 0 : index
    %c0_8 = arith.constant 0 : index
    %c0_9 = arith.constant 0 : index
    %10 = vector.load %arg6[%c0_6, %c0_7, %c0_8, %c0_9] : memref<1x8x16x128xf32, #tpu.memory_space<vmem>>, vector<1x8x16x128xf32>
    %11 = vector.shape_cast %10 : vector<1x8x16x128xf32> to vector<8x16x128xf32>
    %12 = vector.shape_cast %9 : vector<8x16x128xf32> to vector<1x8x16x128xf32>
    tpu.vector_store %arg6[%c0_6, %c0_7, %c0_8, %c0_9], %12 {strides = array<i32>} : memref<1x8x16x128xf32, #tpu.memory_space<vmem>>, vector<1x8x16x128xf32>,
    return
  }
  func.func @transform_0(%arg0: i32, %arg1: i32, %arg2: i32) -> (i32, i32, i32, i32) {
    %c0_i32 = arith.constant 0 : i32
    %c0_i32_0 = arith.constant 0 : i32
    %c0_i32_1 = arith.constant 0 : i32
    %c0_i32_2 = arith.constant 0 : i32
    return %arg0, %c0_i32, %c0_i32_0, %c0_i32_1 : i32, i32, i32, i32
  }
  func.func @transform_1(%arg0: i32, %arg1: i32, %arg2: i32) -> (i32, i32) {
    %c0_i32 = arith.constant 0 : i32
    %c0_i32_0 = arith.constant 0 : i32
    return %c0_i32, %arg2 : i32, i32
  }
  func.func @transform_2(%arg0: i32, %arg1: i32, %arg2: i32) -> (i32, i32) {
    %c0_i32 = arith.constant 0 : i32
    %c0_i32_0 = arith.constant 0 : i32
    return %c0_i32, %arg2 : i32, i32
  }
  func.func @transform_3(%arg0: i32, %arg1: i32, %arg2: i32) -> (i32, i32, i32, i32) {
    %c0_i32 = arith.constant 0 : i32
    %c0_i32_0 = arith.constant 0 : i32
    return %arg0, %arg1, %c0_i32, %arg2 : i32, i32, i32, i32
  }
}

</mosaic_0001>

<bundles_post_ra>
// kernel: tpu_custom_call.1
= control target key start
LH: loop header
LB: loop body
LE: loop exit
PB: predicated region body
PF: predicated region fallthrough
CT: control target
= control target key end

     0   :  { %8 = vsyncpa [#allocation4], 0  ;;  %s2471_s0 = inlined_call_operand.vmem [shape: f32[2,18,18,4], index: 0, kind: input, shape index: {}]   ;;  %s2472_s1 = inlined_call_operand.vmem [shape: f32[36,128], index: 1, kind: input, shape index: {}]   ;;  %s2473_s2 = inlined_call_operand.vmem [shape: f32[1,128], index: 2, kind: input, shape index: {}]   ;;  %s2474_s3 = inlined_call_operand.hbm [shape: f32[2,16,16,128], index: 3, kind: output, shape index: {}]  }
   0x1   :  { %10 = vsyncpa [#allocation4 + $0x1], 0  ;;  %s1612_s12 = smov 0   ;;  %s1614_s13 = smov 0  }
   0x2   :  { %s1616_s14 = smov 0   ;;  %s1618_s15 = smov 0  }
   0x3   :  { %s1620_s16 = smov 0   ;;  %s1622_s17 = smov 0  }
   0x4   :  { %s1624_s18 = smov 0   ;;  %s1626_s19 = smov 0  }
   0x5 LB: > { %s1299_s20 = sadd.s32 4294967295, %s1580_s19   ;;  %s1300_s21 = sadd.s32 4294967294, %s1580_s19   ;;  %s1580_s19 = sphi %s1626_s19, %s16_s19   ;;  %s1576_s18 = sphi %s1624_s18, %s2519_s18   ;;  %s1572_s17 = sphi %s1622_s17, %s2518_s17   ;;  %s1568_s16 = sphi %s1620_s16, %s2517_s16   ;;  %s1564_s15 = sphi %s1618_s15, %s2516_s15   ;;  %s1560_s14 = sphi %s1616_s14, %s2515_s14   ;;  %s1556_s13 = sphi %s1614_s13, %s2514_s13   ;;  %s1552_s12 = sphi %s1612_s12, %s2513_s12  }
   0x6   : > { %s31_s22 = sadd.s32 1, %s1572_s17  ;;  %s35_s23 = sadd.s32 1, %s1576_s18 }
   0x7   : > { %p33_p0 = scmp.ge.s32.totalorder %s31_s22, 2  ;;  %p134_p1 = scmp.ne.s32.totalorder %s1560_s14, %s1556_s13 }
   0x8   : > { %p135_p2 = scmp.eq.s32.totalorder %s1299_s20, 3  ;;  %p140_p5 = scmp.ne.s32.totalorder %s1556_s13, %s1552_s12 }
   0x9   : > { %s2521_s22 = smov (%p33_p0, %s31_s22), 0  ;;  %s2523_s23 = smov (!%p33_p0, %s35_s23), %s1576_s18 }
   0xa   : > { %s118_s24 = ssub.s32 %s1572_s17, %s2521_s22  ;;  %p1663_p3 = por %p135_p2, %p134_p1 }
   0xb   : > { %p37_p4 = scmp.ge.s32.totalorder %s2523_s23, 2  ;;  %p141_p6 = scmp.eq.s32.totalorder %s1300_s21, 3 }
   0xc   : > { %p1305_p7 = scmp.ge.s32.totalorder %s1580_s19, 1  ;;  %p180_p9 = scmp.lt.s32.totalorder %s1580_s19, 5 }
   0xd   : > { %s2525_s23 = smov (%p37_p4, %s2523_s23), 0  ;;  %p1672_p8 = por %p141_p6, %p140_p5 }
   0xe   : > { %s117_s27 = ssub.s32 %s1576_s18, %s2525_s23  ;;  %s124_s28 = sadd.s32 1, %s1560_s14 }
   0xf   : > { %s119_s29 = sor.u32 %s118_s24, %s117_s27  ;;  %p181_p10 = pnand %p1305_p7, %p180_p9 }
  0x10   : > { %p122_p11 = scmp.eq.s32.totalorder %s119_s29, 0 }
  0x11   : > { %184 = sbr.rel (%p181_p10) target bundleno = 643 (0x283), region = 32 }
  0x12   : > { %s1681_s30 = scalar_select %p122_p11, %s1560_s14, %s124_s28  }
  0x18   : > { %p211_p12 = scmp.lt.s32.totalorder %s1568_s16, 1  ;;  %s1309_s5 = smul.u32 192, %s1564_s15  ;;  %vm285_vm0 = vcmask 1046528   ;;  %vm326_vm1 = vcmask 1045504   ;;  %vm1007_vm2 = vcmask 1043456   ;;  %vm777_vm3 = vcmask 31744  }
  0x19   : > { %s1582_s11 = smov 4   ;;  %s1583_s20 = smov 8   ;;  %vm794_vm4 = vcmask 64512   ;;  %vm811_vm5 = vcmask 97280   ;;  %vm828_vm6 = vcmask 130048   ;;  %vm845_vm7 = vcmask 162816  }
  0x1a   : > { %s212_s4 = scalar_select %p211_p12, %s1568_s16, 1  ;;  %vm862_vm8 = vcmask 195584   ;;  %vm879_vm9 = vcmask 228352   ;;  %vm896_vm10 = vcmask 261120   ;;  %vm913_vm11 = vcmask 293888  }
  0x1b   : > { %s2477_s21 = smov 12   ;;  %s1585_s24 = smov 16  }
  0x1c   : > { %s1405_s6 = smul.u32 432, %s212_s4  ;;  %s1586_s27 = smov 20  }
  0x1d   : > { %s2479_s28 = smov 24   ;;  %s2475_s29 = smov 28  }
  0x1e   : > { %s215_s9 = scalar_lea.vmem %s2471_s0, %s1405_s6  ;;  %s1589_s4 = smov 32  }
  0x1f   : > { %s1689_s10 = scalar_lea.vmem %s215_s9, %s1309_s5  ;;  %s2503_s6 = smov 28  }
  0x20   : > { %v1692_v0 = vld [vmem:[%s1689_s10 + $0x8] sm:$0xff]  ;;  %v233_v1 = vld [vmem:[%s1689_s10 + $0x10] sm:$0x3]  ;;  %v1696_v2 = vld [vmem:[%s1689_s10] sm:$0xff]  ;;  %s1335_s7 = sshll.u32 %s1564_s15, 4  ;;  %s1331_s8 = sshll.u32 %s1568_s16, 5 }
  0x21   : > { %v287_v3 = vrot.slane %v1692_v0, 1  ;;  %v289_v4 = vrot.slane %v233_v1, 1  ;;  %v286_v5 = vrot.slane %v1696_v2, 1  ;;  %v1701_v6 = vld [vmem:[%s1689_s10 + $0x68] sm:$0xff]  ;;  %v245_v7 = vld [vmem:[%s1689_s10 + $0x70] sm:$0x3]  ;;  %s1187_s9 = sadd.s32 %s1335_s7, %s1331_s8 }
  0x22   : > { %v307_v8 = vrot.slane %v1701_v6, 1  ;;  %v309_v9 = vrot.slane %v245_v7, 1  ;;  %v1706_v10 = vld [vmem:[%s1689_s10 + $0x60] sm:$0xff]  ;;  %v348_v14 = vrot.slane %v1701_v6, 2  ;;  %v327_v15 = vrot.slane %v1696_v2, 2  ;;  %v1742_v26 = vld [vmem:[%s1689_s10 + $0x78] sm:$0xff] }
  0x23   : > { %v290_v11 = vsel %vm285_vm0, %v287_v3, %v289_v4  ;;  %v288_v12 = vsel %vm285_vm0, %v286_v5, %v287_v3  ;;  %v306_v13 = vrot.slane %v1706_v10, 1  ;;  %v347_v18 = vrot.slane %v1706_v10, 2  ;;  %v1745_v27 = vld [vmem:[%s1689_s10 + $0x18] sm:$0xff]  ;;  %v1748_v28 = vld [vmem:[%s1689_s10 + $0x80] sm:$0xff]  ;;  %v248_v36 = vld [vmem:[%s1689_s10 + $0x88] sm:$0x3] }
  0x24   : > { %395 = vrot.lane.b32.xlu1 %v290_v11, %s1582_s11  ;;  %393 = vrot.lane.b32.xlu0 %v288_v12, %s1582_s11  ;;  %v1716_v16 = vsel %vm285_vm0, %v307_v8, %v309_v9  ;;  %v328_v19 = vrot.slane %v1692_v0, 2  ;;  %v350_v22 = vrot.slane %v245_v7, 2  ;;  %v330_v23 = vrot.slane %v233_v1, 2  ;;  %v1751_v29 = vld [vmem:[%s1689_s10 + $0x20] sm:$0xff]  ;;  %v236_v37 = vld [vmem:[%s1689_s10 + $0x28] sm:$0x3] }
  0x25   : > { %v1719_v17 = vsel %vm285_vm0, %v306_v13, %v307_v8  ;;  %v1728_v20 = vsel %vm326_vm1, %v347_v18, %v348_v14  ;;  %v311_v30 = vrot.slane %v1742_v26, 1  ;;  %v312_v31 = vrot.slane %v1748_v28, 1  ;;  %v1809_v52 = vld [vmem:[%s1689_s10 + $0x90] sm:$0xff]  ;;  %v1822_v54 = vld [vmem:[%s1689_s10 + $0x98] sm:$0xff]  ;;  %v251_v62 = vld [vmem:[%s1689_s10 + $0xa0] sm:$0x3] }
  0x26   : > { %v329_v21 = vsel %vm326_vm1, %v327_v15, %v328_v19  ;;  %v1735_v24 = vsel %vm326_vm1, %v348_v14, %v350_v22  ;;  %v331_v25 = vsel %vm326_vm1, %v328_v19, %v330_v23  ;;  %v291_v32 = vrot.slane %v1745_v27, 1  ;;  %v1812_v53 = vld [vmem:[%s1689_s10 + $0x30] sm:$0xff]  ;;  %v1825_v55 = vld [vmem:[%s1689_s10 + $0x38] sm:$0xff]  ;;  %v239_v63 = vld [vmem:[%s1689_s10 + $0x40] sm:$0x3]  ;;  %s1332_s5 = sshll.u32 %s1187_s9, 7 }
  0x27   : > { %v292_v33 = vrot.slane %v1751_v29, 1  ;;  %v1766_v34 = vsel %vm285_vm0, %v311_v30, %v312_v31  ;;  %v314_v38 = vrot.slane %v248_v36, 1  ;;  %v294_v39 = vrot.slane %v236_v37, 1  ;;  %2496 = vst [vmem:[#allocation10_spill] sm:$0xff] %v1825_v55  ;;  %v946_v14 = vld [vmem:[%s2472_s1] sm:$0xff]  ;;  %v947_v15 = vld [vmem:[%s2472_s1 + $0x8] sm:$0xff]  ;;  %s2408_s15 = scalar_lea.hbm %s2474_s3, %s1332_s5 }
  0x28   : > { %411 = vrot.lane.b32.xlu1 %v1716_v16, %s1582_s11  ;;  %409 = vrot.lane.b32.xlu0 %v1719_v17, %s1582_s11  ;;  %2492 = vst [vmem:[#allocation6_spill] sm:$0xff] %v1766_v34  ;;  %v352_v40 = vrot.slane %v1742_v26, 2  ;;  %v353_v41 = vrot.slane %v1748_v28, 2  ;;  %v332_v44 = vrot.slane %v1745_v27, 2  ;;  %v333_v45 = vrot.slane %v1751_v29, 2  ;;  %v948_v19 = vld [vmem:[%s2472_s1 + $0x10] sm:$0xff] }
  0x29   : > { %v293_v35 = vsel %vm285_vm0, %v291_v32, %v292_v33  ;;  %v1780_v42 = vsel %vm285_vm0, %v312_v31, %v314_v38  ;;  %v295_v43 = vsel %vm285_vm0, %v292_v33, %v294_v39  ;;  %v355_v48 = vrot.slane %v248_v36, 2  ;;  %v950_v30 = vld [vmem:[%s2472_s1 + $0x20] sm:$0xf]  ;;  %v1895_v33 = vld [vmem:[%s1689_s10 + $0xa8] sm:$0xff] }
  0x2a   : > { %2493 = vst [vmem:[#allocation7_spill] sm:$0xff] %v1780_v42  ;;  %v1789_v46 = vsel %vm326_vm1, %v352_v40, %v353_v41  ;;  %v334_v47 = vsel %vm326_vm1, %v332_v44, %v333_v45  ;;  %v335_v49 = vrot.slane %v236_v37, 2  ;;  %v316_v56 = vrot.slane %v1809_v52, 1  ;;  %2497 = vst [vmem:[#allocation11_spill] sm:$0xff] %v1895_v33  ;;  %v1922_v44 = vld [vmem:[%s1689_s10 + $0x50] sm:$0xff] }
  0x2b   : > { %2494 = vst [vmem:[#allocation8_spill] sm:$0xff] %v1789_v46  ;;  %v1802_v50 = vsel %vm326_vm1, %v353_v41, %v355_v48  ;;  %v317_v57 = vrot.slane %v1822_v54, 1  ;;  %v296_v58 = vrot.slane %v1812_v53, 1  ;;  %v297_v59 = vrot.slane %v1825_v55, 1  ;;  %2501 = vst [vmem:[#allocation14_spill] sm:$0xff] %v1922_v44 }
  0x2c   : > { %457 = vrot.lane.b32.xlu1 %v1728_v20, %s1583_s20  ;;  %441 = vrot.lane.b32.xlu0 %v329_v21, %s1583_s20  ;;  %2495 = vst [vmem:[#allocation9_spill] sm:$0xff] %v1802_v50  ;;  %v336_v51 = vsel %vm326_vm1, %v333_v45, %v335_v49  ;;  %v319_v1 = vrot.slane %v251_v62, 1  ;;  %v299_v3 = vrot.slane %v239_v63, 1  ;;  %v357_v4 = vrot.slane %v1809_v52, 2  ;;  %v949_v21 = vld [vmem:[%s2472_s1 + $0x18] sm:$0xff] }
  0x2d   : > { %v318_v60 = vsel %vm285_vm0, %v316_v56, %v317_v57  ;;  %v298_v61 = vsel %vm285_vm0, %v296_v58, %v297_v59  ;;  %v358_v5 = vrot.slane %v1822_v54, 2  ;;  %v337_v9 = vrot.slane %v1812_v53, 2 }
  0x2e   : > { %v320_v7 = vsel %vm285_vm0, %v317_v57, %v319_v1  ;;  %v300_v8 = vsel %vm285_vm0, %v297_v59, %v299_v3  ;;  %v338_v11 = vrot.slane %v1825_v55, 2  ;;  %v1391_v18 = vpack.c.bf16 %v947_v15, %v946_v14 }
  0x2f   : > { %v359_v12 = vsel %vm326_vm1, %v357_v4, %v358_v5  ;;  %v1395_v22 = vpack.c.bf16 %v949_v21, %v948_v19  ;;  %v360_v23 = vrot.slane %v251_v62, 2  ;;  %v321_v45 = vrot.slane %v1895_v33, 1  ;;  %v242_v62 = vld [vmem:[%s1689_s10 + $0x58] sm:$0x3] }
  0x30   : > { %459 = vrot.lane.b32.xlu1 %v1735_v24, %s1583_s20  ;;  %443 = vrot.lane.b32.xlu0 %v331_v25, %s1583_s20  ;;  %v339_v13 = vsel %vm326_vm1, %v337_v9, %v338_v11  ;;  %v340_v25 = vrot.slane %v239_v63, 2  ;;  %v302_v49 = vrot.slane %v1922_v44, 1  ;;  %v304_v4 = vrot.slane %v242_v62, 1 }
  0x31   : > { %1392 = vmatprep.subr.bf16.mxu0 %v1391_v18  ;;  %1399 = vmatprep.subr.bf16.mxu1 %v1391_v18  ;;  %v361_v31 = vsel %vm326_vm1, %v358_v5, %v360_v23  ;;  %v343_v14 = vrot.slane %v1922_v44, 2 }
  0x32   : > { %1394 = vmatpush3.bf16.msra.mxu0 %v1391_v18  ;;  %1402 = vmatpush3.bf16.msra.mxu1 %v1391_v18  ;;  %v341_v32 = vsel %vm326_vm1, %v338_v11, %v340_v25  ;;  %v305_v9 = vsel %vm285_vm0, %v302_v49, %v304_v4  ;;  %v362_v11 = vrot.slane %v1895_v33, 2 }
  0x33   : > { %1396 = vmatprep.subr.bf16.mxu0 %v1395_v22  ;;  %1400 = vmatprep.subr.bf16.mxu1 %v1395_v22 }
  0x34   : > { %505 = vrot.lane.b32.xlu1 %v1742_v26, %s2477_s21  ;;  %489 = vrot.lane.b32.xlu0 %v1745_v27, %s2477_s21 }
  0x36   : > { %1398 = vmatpush3.bf16.msra.mxu0 %v1395_v22  ;;  %1403 = vmatpush3.bf16.msra.mxu1 %v1395_v22 }
  0x37   : > { %1365 = vmatprep.subr.msk.mxu0 %vm1007_vm2, %v950_v30  ;;  %1401 = vmatprep.subr.msk.mxu1 %vm1007_vm2, %v950_v30 }
  0x38   : > { %507 = vrot.lane.b32.xlu1 %v1748_v28, %s2477_s21  ;;  %491 = vrot.lane.b32.xlu0 %v1751_v29, %s2477_s21 }
  0x3a   : > { %1366 = vmatpush3.msk.msra.mxu0 %vm1007_vm2, %v950_v30  ;;  %1404 = vmatpush3.msk.msra.mxu1 %vm1007_vm2, %v950_v30 }
  0x3c   : > { %553 = vrot.lane.b32.xlu1 %v1766_v34, %s1585_s24  ;;  %537 = vrot.lane.b32.xlu0 %v293_v35, %s1585_s24 }
  0x40   : > { %413 = vrot.lane.b32.xlu1 %v1766_v34, %s1582_s11  ;;  %397 = vrot.lane.b32.xlu0 %v293_v35, %s1582_s11  ;;  %v1898_v35 = vld [vmem:[%s1689_s10 + $0x48] sm:$0xff] }
  0x41   : > { %2498 = vst [vmem:[#allocation12_spill] sm:$0xff] %v1898_v35  ;;  %v301_v48 = vrot.slane %v1898_v35, 1 }
  0x43   : > { %v303_v58 = vsel %vm285_vm0, %v301_v48, %v302_v49 }
  0x44   : > { %555 = vrot.lane.b32.xlu1 %v1780_v42, %s1585_s24  ;;  %539 = vrot.lane.b32.xlu0 %v295_v43, %s1585_s24 }
  0x48   : > { %601 = vrot.lane.b32.xlu1 %v1789_v46, %s1586_s27  ;;  %585 = vrot.lane.b32.xlu0 %v334_v47, %s1586_s27 }
  0x4c   : > { %415 = vrot.lane.b32.xlu1 %v1780_v42, %s1582_s11  ;;  %399 = vrot.lane.b32.xlu0 %v295_v43, %s1582_s11  ;;  %v1919_v43 = vld [vmem:[%s1689_s10 + $0xb0] sm:$0xff] }
  0x4d   : > { %2500 = vst [vmem:[#allocation13_spill] sm:$0xff] %v1919_v43 }
  0x50   : > { %461 = vrot.lane.b32.xlu1 %v1789_v46, %s1583_s20  ;;  %445 = vrot.lane.b32.xlu0 %v334_v47, %s1583_s20  ;;  %v322_v47 = vrot.slane %v1919_v43, 1 }
  0x52   : > { %v323_v57 = vsel %vm285_vm0, %v321_v45, %v322_v47 }
  0x54   : > { %603 = vrot.lane.b32.xlu1 %v1802_v50, %s1586_s27  ;;  %587 = vrot.lane.b32.xlu0 %v336_v51, %s1586_s27 }
  0x58   : > { %649 = vrot.lane.b32.xlu1 %v1809_v52, %s2479_s28  ;;  %633 = vrot.lane.b32.xlu0 %v1812_v53, %s2479_s28 }
  0x5c   : > { %463 = vrot.lane.b32.xlu1 %v1802_v50, %s1583_s20  ;;  %447 = vrot.lane.b32.xlu0 %v336_v51, %s1583_s20 }
  0x60   : > { %509 = vrot.lane.b32.xlu1 %v1809_v52, %s2477_s21  ;;  %493 = vrot.lane.b32.xlu0 %v1812_v53, %s2477_s21 }
  0x64   : > { %651 = vrot.lane.b32.xlu1 %v1822_v54, %s2479_s28  ;;  %635 = vrot.lane.b32.xlu0 %v1825_v55, %s2479_s28  ;;  %s2502_s28 = smov 12  }
  0x68   : > { %697 = vrot.lane.b32.xlu1 %v318_v60, %s2475_s29  ;;  %681 = vrot.lane.b32.xlu0 %v298_v61, %s2475_s29 }
  0x6c   : > { %511 = vrot.lane.b32.xlu1 %v1822_v54, %s2477_s21  ;;  %495 = vrot.lane.b32.xlu0 %v1825_v55, %s2477_s21  ;;  %s2499_s21 = smov 24  }
  0x70   : > { %557 = vrot.lane.b32.xlu1 %v318_v60, %s1585_s24  ;;  %541 = vrot.lane.b32.xlu0 %v298_v61, %s1585_s24 }
  0x74   : > { %699 = vrot.lane.b32.xlu1 %v320_v7, %s2475_s29  ;;  %683 = vrot.lane.b32.xlu0 %v300_v8, %s2475_s29 }
  0x78   : > { %745 = vrot.lane.b32.xlu1 %v359_v12, %s1589_s4  ;;  %729 = vrot.lane.b32.xlu0 %v339_v13, %s1589_s4 }
  0x7c   : > { %417 = vrot.lane.b32.xlu1 %v318_v60, %s1582_s11  ;;  %401 = vrot.lane.b32.xlu0 %v298_v61, %s1582_s11  ;;  %v254_v61 = vld [vmem:[%s1689_s10 + $0xb8] sm:$0x3] }
  0x7d   : > { %v324_v3 = vrot.slane %v254_v61, 1  ;;  %v365_v45 = vrot.slane %v254_v61, 2 }
  0x80   : > { %559 = vrot.lane.b32.xlu1 %v320_v7, %s1585_s24  ;;  %543 = vrot.lane.b32.xlu0 %v300_v8, %s1585_s24 }
  0x84   : > { %605 = vrot.lane.b32.xlu1 %v359_v12, %s1586_s27  ;;  %589 = vrot.lane.b32.xlu0 %v339_v13, %s1586_s27 }
  0x88   : > { %747 = vrot.lane.b32.xlu1 %v361_v31, %s1589_s4  ;;  %731 = vrot.lane.b32.xlu0 %v341_v32, %s1589_s4 }
  0x8c   : > { %419 = vrot.lane.b32.xlu1 %v320_v7, %s1582_s11  ;;  %403 = vrot.lane.b32.xlu0 %v300_v8, %s1582_s11  ;;  %v325_v8 = vsel %vm285_vm0, %v322_v47, %v324_v3  ;;  %v345_v47 = vrot.slane %v242_v62, 2 }
  0x90   : > { %465 = vrot.lane.b32.xlu1 %v359_v12, %s1583_s20  ;;  %449 = vrot.lane.b32.xlu0 %v339_v13, %s1583_s20  ;;  %v363_v12 = vrot.slane %v1919_v43, 2  ;;  %v342_v13 = vrot.slane %v1898_v35, 2 }
  0x92   : > { %v364_v19 = vsel %vm326_vm1, %v362_v11, %v363_v12  ;;  %v344_v21 = vsel %vm326_vm1, %v342_v13, %v343_v14 }
  0x94   : > { %607 = vrot.lane.b32.xlu1 %v361_v31, %s1586_s27  ;;  %591 = vrot.lane.b32.xlu0 %v341_v32, %s1586_s27 }
  0x96   : > { %v1900_v36 = vpop.permute.xlu1 %395  ;;  %v1902_v37 = vpop.permute.xlu0 %393 }
  0x98   : > { %653 = vrot.lane.b32.xlu1 %v1895_v33, %s2499_s21  ;;  %637 = vrot.lane.b32.xlu0 %v1898_v35, %s2499_s21 }
  0x9a   : > { %v1908_v38 = vpop.permute.xlu1 %411  ;;  %v1910_v39 = vpop.permute.xlu0 %409 }
  0x9c   : > { %467 = vrot.lane.b32.xlu1 %v361_v31, %s1583_s20  ;;  %451 = vrot.lane.b32.xlu0 %v341_v32, %s1583_s20 }
  0x9e   : > { %v1914_v40 = vpop.permute.xlu1 %457  ;;  %v1916_v41 = vpop.permute.xlu0 %441 }
  0xa0   : > { %513 = vrot.lane.b32.xlu1 %v1895_v33, %s2502_s28  ;;  %497 = vrot.lane.b32.xlu0 %v1898_v35, %s2502_s28 }
  0xa2   : > { %v1932_v51 = vpop.permute.xlu1 %459  ;;  %v1934_v56 = vpop.permute.xlu0 %443 }
  0xa4   : > { %655 = vrot.lane.b32.xlu1 %v1919_v43, %s2499_s21  ;;  %639 = vrot.lane.b32.xlu0 %v1922_v44, %s2499_s21 }
  0xa6   : > { %v1942_v59 = vpop.permute.xlu1 %505  ;;  %v1944_v60 = vpop.permute.xlu0 %489 }
  0xa8   : > { %701 = vrot.lane.b32.xlu1 %v323_v57, %s2503_s6  ;;  %685 = vrot.lane.b32.xlu0 %v303_v58, %s2503_s6 }
  0xaa   : > { %v1950_v63 = vpop.permute.xlu1 %507  ;;  %v1952_v1 = vpop.permute.xlu0 %491 }
  0xac   : > { %515 = vrot.lane.b32.xlu1 %v1919_v43, %s2502_s28  ;;  %499 = vrot.lane.b32.xlu0 %v1922_v44, %s2502_s28  ;;  %v2034_v43 = vld [vmem:[%s1689_s10 + $0xc8] sm:$0xff] }
  0xad   : > { %v371_v46 = vrot.slane %v2034_v43, 1 }
  0xae   : > { %v1958_v5 = vpop.permute.xlu1 %553  ;;  %v1960_v7 = vpop.permute.xlu0 %537 }
  0xb0   : > { %561 = vrot.lane.b32.xlu1 %v323_v57, %s1585_s24  ;;  %545 = vrot.lane.b32.xlu0 %v303_v58, %s1585_s24 }
  0xb2   : > { %v414_v15 = vpop.permute.xlu1 %413  ;;  %v398_v18 = vpop.permute.xlu0 %397 }
  0xb3   : > { %v788_v35 = vsel %vm777_vm3, %v1742_v26, %v414_v15  ;;  %v780_v33 = vsel %vm777_vm3, %v1745_v27, %v398_v18 }
  0xb4   : > { %703 = vrot.lane.b32.xlu1 %v325_v8, %s2503_s6  ;;  %687 = vrot.lane.b32.xlu0 %v305_v9, %s2503_s6 }
  0xb6   : > { %v1974_v22 = vpop.permute.xlu1 %555  ;;  %v1976_v23 = vpop.permute.xlu0 %539 }
  0xb8   : > { %749 = vrot.lane.b32.xlu1 %v364_v19, %s1589_s4  ;;  %733 = vrot.lane.b32.xlu0 %v344_v21, %s1589_s4 }
  0xba   : > { %v1980_v25 = vpop.permute.xlu1 %601  ;;  %v1982_v30 = vpop.permute.xlu0 %585 }
  0xbc   : > { %421 = vrot.lane.b32.xlu1 %v323_v57, %s1582_s11  ;;  %405 = vrot.lane.b32.xlu0 %v303_v58, %s1582_s11  ;;  %v366_v57 = vsel %vm326_vm1, %v363_v12, %v365_v45  ;;  %v346_v58 = vsel %vm326_vm1, %v343_v14, %v345_v47  ;;  %v2017_v45 = vld [vmem:[%s1689_s10 + $0xc0] sm:$0xff] }
  0xbd   : > { %v370_v50 = vrot.slane %v2017_v45, 1 }
  0xbe   : > { %v1986_v31 = vpop.permute.xlu1 %415  ;;  %v1988_v32 = vpop.permute.xlu0 %399 }
  0xc0   : > { %563 = vrot.lane.b32.xlu1 %v325_v8, %s1585_s24  ;;  %547 = vrot.lane.b32.xlu0 %v305_v9, %s1585_s24 }
  0xc2   : > { %v462_v48 = vpop.permute.xlu1 %461  ;;  %v446_v49 = vpop.permute.xlu0 %445 }
  0xc4   : > { %609 = vrot.lane.b32.xlu1 %v364_v19, %s1586_s27  ;;  %593 = vrot.lane.b32.xlu0 %v344_v21, %s1586_s27 }
  0xc6   : > { %v1996_v3 = vpop.permute.xlu1 %603  ;;  %v1998_v4 = vpop.permute.xlu0 %587 }
  0xc8   : > { %751 = vrot.lane.b32.xlu1 %v366_v57, %s1589_s4  ;;  %735 = vrot.lane.b32.xlu0 %v346_v58, %s1589_s4 }
  0xca   : > { %v2002_v61 = vpop.permute.xlu1 %649  ;;  %v2004_v62 = vpop.permute.xlu0 %633 }
  0xcc   : > { %423 = vrot.lane.b32.xlu1 %v325_v8, %s1582_s11  ;;  %407 = vrot.lane.b32.xlu0 %v305_v9, %s1582_s11 }
  0xce   : > { %v2008_v11 = vpop.permute.xlu1 %463  ;;  %v2010_v12 = vpop.permute.xlu0 %447 }
  0xd0   : > { %469 = vrot.lane.b32.xlu1 %v364_v19, %s1583_s20  ;;  %453 = vrot.lane.b32.xlu0 %v344_v21, %s1583_s20 }
  0xd2   : > { %v510_v13 = vpop.permute.xlu1 %509  ;;  %v494_v14 = vpop.permute.xlu0 %493 }
  0xd4   : > { %611 = vrot.lane.b32.xlu1 %v366_v57, %s1586_s27  ;;  %595 = vrot.lane.b32.xlu0 %v346_v58, %s1586_s27 }
  0xd6   : > { %v2019_v8 = vpop.permute.xlu1 %651  ;;  %v2021_v9 = vpop.permute.xlu0 %635 }
  0xd8   : > { %657 = vrot.lane.b32.xlu1 %v2017_v45, %s2499_s21  ;;  %641 = vrot.lane.b32.xlu0 %v1706_v10, %s2499_s21 }
  0xda   : > { %v698_v19 = vpop.permute.xlu1 %697  ;;  %v682_v21 = vpop.permute.xlu0 %681 }
  0xdc   : > { %471 = vrot.lane.b32.xlu1 %v366_v57, %s1583_s20  ;;  %455 = vrot.lane.b32.xlu0 %v346_v58, %s1583_s20  ;;  %v805_v57 = vsel %vm794_vm4, %v788_v35, %v462_v48  ;;  %v797_v58 = vsel %vm794_vm4, %v780_v33, %v446_v49  ;;  %v778_v33 = vsel %vm777_vm3, %v1696_v2, %v1902_v37 }
  0xdd   : > { %v822_v15 = vsel %vm811_vm5, %v805_v57, %v510_v13  ;;  %v814_v42 = vsel %vm811_vm5, %v797_v58, %v494_v14  ;;  %v786_v35 = vsel %vm777_vm3, %v1706_v10, %v1910_v39  ;;  %v372_v49 = vsel %vm285_vm0, %v370_v50, %v371_v46 }
  0xde   : > { %v2029_v47 = vpop.permute.xlu1 %511  ;;  %v2031_v44 = vpop.permute.xlu0 %495  ;;  %v803_v48 = vsel %vm794_vm4, %v786_v35, %v1914_v40  ;;  %v376_v35 = vrot.slane %v2034_v43, 2 }
  0xdf   : > { %v820_v2 = vsel %vm811_vm5, %v803_v48, %v1942_v59 }
  0xe0   : > { %517 = vrot.lane.b32.xlu1 %v2017_v45, %s2502_s28  ;;  %501 = vrot.lane.b32.xlu0 %v1706_v10, %s2502_s28  ;;  %v837_v40 = vsel %vm828_vm6, %v820_v2, %v1958_v5 }
  0xe1   : > { %v854_v50 = vsel %vm845_vm7, %v837_v40, %v1980_v25 }
  0xe2   : > { %v558_v27 = vpop.permute.xlu1 %557  ;;  %v542_v18 = vpop.permute.xlu0 %541 }
  0xe3   : > { %v2051_v34 = vsel %vm828_vm6, %v822_v15, %v558_v27  ;;  %v2054_v55 = vsel %vm828_vm6, %v814_v42, %v542_v18  ;;  %v795_v42 = vsel %vm794_vm4, %v778_v33, %v1916_v41  ;;  %v781_v15 = vsel %vm777_vm3, %v1751_v29, %v1988_v32 }
  0xe4   : > { %659 = vrot.lane.b32.xlu1 %v2034_v43, %s2499_s21  ;;  %643 = vrot.lane.b32.xlu0 %v1701_v6, %s2499_s21  ;;  %v812_v10 = vsel %vm811_vm5, %v795_v42, %v1944_v60  ;;  %v871_v60 = vsel %vm862_vm8, %v854_v50, %v2002_v61  ;;  %v375_v27 = vrot.slane %v2017_v45, 2  ;;  %v798_v33 = vsel %vm794_vm4, %v781_v15, %v2010_v12 }
  0xe5   : > { %v829_v41 = vsel %vm828_vm6, %v812_v10, %v1960_v7  ;;  %v888_v7 = vsel %vm879_vm9, %v871_v60, %v698_v19  ;;  %v815_v32 = vsel %vm811_vm5, %v798_v33, %v2031_v44 }
  0xe6   : > { %v2075_v37 = vpop.permute.xlu1 %699  ;;  %v2077_v39 = vpop.permute.xlu0 %683  ;;  %v846_v59 = vsel %vm845_vm7, %v829_v41, %v1982_v30  ;;  %v2097_v30 = vld [vmem:[%s1689_s10 + $0xd0] sm:$0x3] }
  0xe7   : > { %v863_v5 = vsel %vm862_vm8, %v846_v59, %v2004_v62  ;;  %v373_v61 = vrot.slane %v2097_v30, 1 }
  0xe8   : > { %705 = vrot.lane.b32.xlu1 %v372_v49, %s2503_s6  ;;  %689 = vrot.lane.b32.xlu0 %v1719_v17, %s2503_s6  ;;  %v880_v25 = vsel %vm879_vm9, %v863_v5, %v682_v21  ;;  %v789_v21 = vsel %vm777_vm3, %v1748_v28, %v1986_v31 }
  0xe9   : > { %v806_v18 = vsel %vm794_vm4, %v789_v21, %v2008_v11  ;;  %v374_v31 = vsel %vm285_vm0, %v371_v46, %v373_v61  ;;  %v779_v46 = vsel %vm777_vm3, %v1692_v0, %v1900_v36  ;;  %v377_v0 = vsel %vm326_vm1, %v375_v27, %v376_v35 }
  0xea   : > { %v746_v13 = vpop.permute.xlu1 %745  ;;  %v730_v14 = vpop.permute.xlu0 %729  ;;  %v823_v29 = vsel %vm811_vm5, %v806_v18, %v2029_v47  ;;  %v796_v47 = vsel %vm794_vm4, %v779_v46, %v1934_v56 }
  0xeb   : > { %v905_v57 = vsel %vm896_vm10, %v888_v7, %v746_v13  ;;  %v897_v58 = vsel %vm896_vm10, %v880_v25, %v730_v14  ;;  %v813_v36 = vsel %vm811_vm5, %v796_v47, %v1952_v1 }
  0xec   : > { %922 = vst.msk [vmem:[#allocation2 + $0x40] sm:$0xff] %vm913_vm11, %v905_v57  ;;  %914 = vst.msk [vmem:[#allocation2] sm:$0xff] %vm913_vm11, %v897_v58  ;;  %519 = vrot.lane.b32.xlu1 %v2034_v43, %s2502_s28  ;;  %503 = vrot.lane.b32.xlu0 %v1701_v6, %s2502_s28  ;;  %v787_v43 = vsel %vm777_vm3, %v1701_v6, %v1908_v38  ;;  %v830_v56 = vsel %vm828_vm6, %v813_v36, %v1976_v23  ;;  %v259_v57 = vld [vmem:[%s1689_s10 + $0xe0] sm:$0xff]  ;;  %v2507_v36 = vld [vmem:[#allocation8_spill] sm:$0xff] }
  0xed   : > { %v804_v44 = vsel %vm794_vm4, %v787_v43, %v1932_v51  ;;  %v847_v10 = vsel %vm845_vm7, %v830_v56, %v1998_v4  ;;  %v384_v61 = vrot.slane %v259_v57, 1  ;;  %v2506_v43 = vld [vmem:[#allocation7_spill] sm:$0xff] }
  0xee   : > { %v418_v62 = vpop.permute.xlu1 %417  ;;  %v402_v19 = vpop.permute.xlu0 %401  ;;  %v821_v6 = vsel %vm811_vm5, %v804_v44, %v1950_v63  ;;  %v864_v1 = vsel %vm862_vm8, %v847_v10, %v2021_v9 }
  0xef   : > { %v838_v51 = vsel %vm828_vm6, %v821_v6, %v1974_v22  ;;  %v881_v23 = vsel %vm879_vm9, %v864_v1, %v2077_v39  ;;  %v790_v50 = vsel %vm777_vm3, %v1809_v52, %v418_v62  ;;  %v782_v59 = vsel %vm777_vm3, %v1812_v53, %v402_v19  ;;  %v258_v53 = vld [vmem:[%s1689_s10 + $0xd8] sm:$0xff]  ;;  %v2504_v19 = vld [vmem:[#allocation10_spill] sm:$0xff] }
  0xf0   : > { %565 = vrot.lane.b32.xlu1 %v372_v49, %s1585_s24  ;;  %549 = vrot.lane.b32.xlu0 %v1719_v17, %s1585_s24  ;;  %v855_v2 = vsel %vm845_vm7, %v838_v51, %v1996_v3  ;;  %v383_v58 = vrot.slane %v258_v53, 1  ;;  %v2508_v1 = vld [vmem:[#allocation9_spill] sm:$0xff] }
  0xf1   : > { %v872_v63 = vsel %vm862_vm8, %v855_v2, %v2019_v8  ;;  %v378_v8 = vrot.slane %v2097_v30, 2 }
  0xf2   : > { %v560_v45 = vpop.permute.xlu1 %559  ;;  %v544_v48 = vpop.permute.xlu0 %543  ;;  %v889_v22 = vsel %vm879_vm9, %v872_v63, %v2075_v37 }
  0xf3   : > { %v2129_v17 = vsel %vm828_vm6, %v823_v29, %v560_v45  ;;  %v2132_v11 = vsel %vm828_vm6, %v815_v32, %v544_v48  ;;  %v938_v42 = vld [vmem:[#allocation2 + $0x40] sm:$0xff]  ;;  %v379_v39 = vsel %vm326_vm1, %v376_v35, %v378_v8  ;;  %v388_v45 = vrot.slane %v258_v53, 2 }
  0xf4   : > { %v930_v12 = vld [vmem:[#allocation2] sm:$0xff]  ;;  %707 = vrot.lane.b32.xlu1 %v374_v31, %s2503_s6  ;;  %1379 = vmatprep.mubr.msk.f32.mxu1 %vm913_vm11, %v938_v42  ;;  %v389_v48 = vrot.slane %v259_v57, 2 }
  0xf5   : > { %691 = vrot.lane.b32.xlu0 %v1716_v16, %s2503_s6  ;;  %1367 = vmatprep.mubr.msk.f32.mxu0 %vm913_vm11, %v930_v12  ;;  %v2505_v42 = vld [vmem:[#allocation6_spill] sm:$0xff] }
  0xf6   : > { %v2154_v38 = vpop.permute.xlu1 %605  ;;  %v2156_v49 = vpop.permute.xlu0 %589  ;;  %v390_v44 = vsel %vm326_vm1, %v388_v45, %v389_v48 }
  0xf7   : > { %v856_v8 = vsel %vm845_vm7, %v2051_v34, %v2154_v38 }
  0xf8   : > { %753 = vrot.lane.b32.xlu1 %v377_v0, %s1589_s4 }
  0xf9   : > { %737 = vrot.lane.b32.xlu0 %v1728_v20, %s1589_s4 }
  0xfa   : > { %v748_v3 = vpop.permute.xlu1 %747  ;;  %v732_v40 = vpop.permute.xlu0 %731 }
  0xfb   : > { %v906_v4 = vsel %vm896_vm10, %v889_v22, %v748_v3  ;;  %v898_v41 = vsel %vm896_vm10, %v881_v23, %v732_v40 }
  0xfc   : > { %923 = vst.msk [vmem:[#allocation2 + $0x48] sm:$0xff] %vm913_vm11, %v906_v4  ;;  %915 = vst.msk [vmem:[#allocation2 + $0x8] sm:$0xff] %vm913_vm11, %v898_v41  ;;  %567 = vrot.lane.b32.xlu1 %v374_v31, %s1585_s24 }
  0xfd   : > { %551 = vrot.lane.b32.xlu0 %v1716_v16, %s1585_s24 }
  0xfe   : > { %v420_v9 = vpop.permute.xlu1 %419  ;;  %v404_v37 = vpop.permute.xlu0 %403 }
  0xff   : > { %v791_v62 = vsel %vm777_vm3, %v1822_v54, %v420_v9  ;;  %v783_v21 = vsel %vm777_vm3, %v2504_v19, %v404_v37  ;;  %v848_v9 = vsel %vm845_vm7, %v2054_v55, %v2156_v49 }
 0x100   : > { %613 = vrot.lane.b32.xlu1 %v377_v0, %s1586_s27 }
 0x101   : > { %597 = vrot.lane.b32.xlu0 %v1728_v20, %s1586_s27 }
 0x102   : > { %v466_v60 = vpop.permute.xlu1 %465  ;;  %v450_v16 = vpop.permute.xlu0 %449 }
 0x103   : > { %v807_v5 = vsel %vm794_vm4, %v790_v50, %v466_v60  ;;  %v799_v7 = vsel %vm794_vm4, %v782_v59, %v450_v16  ;;  %v939_v25 = vld [vmem:[#allocation2 + $0x48] sm:$0xff] }
 0x104   : > { %v931_v13 = vld [vmem:[#allocation2 + $0x8] sm:$0xff]  ;;  %755 = vrot.lane.b32.xlu1 %v379_v39, %s1589_s4  ;;  %1380 = vmatmul.mubr.msk.f32.vlgmr.msra.gmra.mrb[0].mxu1 %vm913_vm11, %v939_v25 }
 0x105   : > { %739 = vrot.lane.b32.xlu0 %v1735_v24, %s1589_s4  ;;  %1368 = vmatmul.mubr.msk.f32.vlgmr.msra.gmra.mrb[0].mxu0 %vm913_vm11, %v931_v13 }
 0x106   : > { %v2200_v20 = vpop.permute.xlu1 %607  ;;  %v2202_v52 = vpop.permute.xlu0 %591 }
 0x108   : > { %615 = vrot.lane.b32.xlu1 %v379_v39, %s1586_s27 }
 0x109   : > { %599 = vrot.lane.b32.xlu0 %v1735_v24, %s1586_s27  ;;  %v260_v24 = vld [vmem:[%s1689_s10 + $0xe8] sm:$0x3]  ;;  %s208_s10 = sand.u32 1, %s1556_s13  }
 0x10a   : > { %v654_v14 = vpop.permute.xlu1 %653  ;;  %v638_v30 = vpop.permute.xlu0 %637  ;;  %v386_v35 = vrot.slane %v260_v24, 1  ;;  %v391_v47 = vrot.slane %v260_v24, 2  ;;  %s1306_s11 = sshll.u32 %s208_s10, 7  ;;  %s2418_s16 = scalar_lea.sflag [#allocation4], %s208_s10 }
 0x10b   : > { %v873_v37 = vsel %vm862_vm8, %v856_v8, %v654_v14  ;;  %v865_v39 = vsel %vm862_vm8, %v848_v9, %v638_v30 }
 0x10c   : > { %661 = vrot.lane.b32.xlu1 %v258_v53, %s2499_s21  ;;  %v387_v12 = vsel %vm285_vm0, %v384_v61, %v386_v35  ;;  %v392_v51 = vsel %vm326_vm1, %v389_v48, %v391_v47 }
 0x10d   : > { %645 = vrot.lane.b32.xlu0 %v1742_v26, %s2499_s21  ;;  %v385_v26 = vsel %vm285_vm0, %v383_v58, %v384_v61  ;;  %v857_v58 = vsel %vm845_vm7, %v2129_v17, %v2200_v20  ;;  %v849_v61 = vsel %vm845_vm7, %v2132_v11, %v2202_v52  ;;  %v2509_v20 = vld [vmem:[#allocation11_spill] sm:$0xff] }
 0x10e   : > { %v468_v15 = vpop.permute.xlu1 %467  ;;  %v452_v27 = vpop.permute.xlu0 %451 }
 0x10f   : > { %v808_v18 = vsel %vm794_vm4, %v791_v62, %v468_v15  ;;  %v800_v33 = vsel %vm794_vm4, %v783_v21, %v452_v27 }
 0x110   : > { %663 = vrot.lane.b32.xlu1 %v259_v57, %s2499_s21 }
 0x111   : > { %647 = vrot.lane.b32.xlu0 %v1748_v28, %s2499_s21 }
 0x112   : > { %v514_v31 = vpop.permute.xlu1 %513  ;;  %v498_v54 = vpop.permute.xlu0 %497 }
 0x113   : > { %v824_v29 = vsel %vm811_vm5, %v807_v5, %v514_v31  ;;  %v816_v32 = vsel %vm811_vm5, %v799_v7, %v498_v54 }
 0x114   : > { %709 = vrot.lane.b32.xlu1 %v385_v26, %s2503_s6  ;;  %v2510_v26 = vld [vmem:[#allocation12_spill] sm:$0xff] }
 0x115   : > { %693 = vrot.lane.b32.xlu0 %v2505_v42, %s2503_s6 }
 0x116   : > { %v656_v46 = vpop.permute.xlu1 %655  ;;  %v640_v28 = vpop.permute.xlu0 %639 }
 0x117   : > { %v874_v62 = vsel %vm862_vm8, %v857_v58, %v656_v46  ;;  %v866_v19 = vsel %vm862_vm8, %v849_v61, %v640_v28 }
 0x118   : > { %711 = vrot.lane.b32.xlu1 %v387_v12, %s2503_s6 }
 0x119   : > { %695 = vrot.lane.b32.xlu0 %v2506_v43, %s2503_s6 }
 0x11a   : > { %v702_v0 = vpop.permute.xlu1 %701  ;;  %v686_v6 = vpop.permute.xlu0 %685 }
 0x11b   : > { %v890_v50 = vsel %vm879_vm9, %v873_v37, %v702_v0  ;;  %v882_v59 = vsel %vm879_vm9, %v865_v39, %v686_v6 }
 0x11c   : > { %757 = vrot.lane.b32.xlu1 %v390_v44, %s1589_s4 }
 0x11d   : > { %741 = vrot.lane.b32.xlu0 %v2507_v36, %s1589_s4 }
 0x11e   : > { %v516_v56 = vpop.permute.xlu1 %515  ;;  %v500_v2 = vpop.permute.xlu0 %499 }
 0x11f   : > { %v825_v10 = vsel %vm811_vm5, %v808_v18, %v516_v56  ;;  %v817_v63 = vsel %vm811_vm5, %v800_v33, %v500_v2 }
 0x120   : > { %759 = vrot.lane.b32.xlu1 %v392_v51, %s1589_s4 }
 0x121   : > { %743 = vrot.lane.b32.xlu0 %v2508_v1, %s1589_s4  ;;  %s2388_s4 = scalar_lea.vmem [#allocation3], %s1306_s11  ;;  %s1590_s11 = smov [#allocation3]  }
 0x122   : > { %v562_v22 = vpop.permute.xlu1 %561  ;;  %v546_v23 = vpop.permute.xlu0 %545  ;;  %s1190_s29 = sshll.u32 %s2388_s4, 4  ;;  %s1490_s24 = sshll.u32 %s1590_s11, 4  ;;  %s2411_s29 = int_to_ptr.vmem [resolvable:$true] %s1190_s29  ;;  %s1491_s24 = int_to_ptr.vmem [resolvable:$false] %s1490_s24 }
 0x123   : > { %v2243_v3 = vsel %vm828_vm6, %v824_v29, %v562_v22  ;;  %v2246_v40 = vsel %vm828_vm6, %v816_v32, %v546_v23  ;;  %s1486_s6 = scalar_lea.vmem %s2411_s29, 2048  ;;  %s1492_s27 = scalar_lea.vmem %s1491_s24, 4096 }
 0x124   : > { %p1487_p13 = scmp.ne.s32.totalorder %s2411_s29, %s1486_s6  ;;  %p1493_p2 = scmp.lt.s32.totalorder %s2411_s29, %s1491_s24 }
 0x125   : > { %p1494_p4 = scmp.lt.s32.totalorder %s1492_s27, %s1486_s6 }
 0x126   : > { %v704_v4 = vpop.permute.xlu1 %703  ;;  %v688_v41 = vpop.permute.xlu0 %687  ;;  %p1488_p0 = pnand %p1487_p13, %p1663_p3 }
 0x127   : > { %v891_v21 = vsel %vm879_vm9, %v874_v62, %v704_v4  ;;  %v883_v15 = vsel %vm879_vm9, %v866_v19, %v688_v41  ;;  %p1495_p5 = por %p1494_p4, %p1493_p2 }
 0x128   : > { %p1489_p1 = pneg %p1488_p0 }
 0x12a   : > { %v750_v60 = vpop.permute.xlu1 %749  ;;  %v734_v16 = vpop.permute.xlu0 %733  ;;  %p1496_p6 = pnand %p1495_p5, %p1489_p1 }
 0x12b   : > { %v907_v5 = vsel %vm896_vm10, %v890_v50, %v750_v60  ;;  %v899_v7 = vsel %vm896_vm10, %v882_v59, %v734_v16 }
 0x12c   : > { %924 = vst.msk [vmem:[#allocation2 + $0x50] sm:$0xff] %vm913_vm11, %v907_v5  ;;  %916 = vst.msk [vmem:[#allocation2 + $0x10] sm:$0xff] %vm913_vm11, %v899_v7 }
 0x12e   : > { %v422_v34 = vpop.permute.xlu1 %421  ;;  %v406_v55 = vpop.permute.xlu0 %405 }
 0x12f   : > { %v792_v52 = vsel %vm777_vm3, %v2509_v20, %v422_v34  ;;  %v784_v35 = vsel %vm777_vm3, %v2510_v26, %v406_v55 }
 0x132   : > { %v564_v38 = vpop.permute.xlu1 %563  ;;  %v548_v49 = vpop.permute.xlu0 %547 }
 0x133   : > { %v2263_v25 = vsel %vm828_vm6, %v825_v10, %v564_v38  ;;  %v2266_v13 = vsel %vm828_vm6, %v817_v63, %v548_v49  ;;  %v932_v53 = vld [vmem:[#allocation2 + $0x10] sm:$0xff] }
 0x134   : > { %v940_v14 = vld [vmem:[#allocation2 + $0x50] sm:$0xff]  ;;  %1370 = vmatprep.mubr.msk.f32.mxu0 %vm913_vm11, %v932_v53 }
 0x135   : > { %1382 = vmatprep.mubr.msk.f32.mxu1 %vm913_vm11, %v940_v14 }
 0x136   : > { %v610_v30 = vpop.permute.xlu1 %609  ;;  %v594_v57 = vpop.permute.xlu0 %593 }
 0x137   : > { %v858_v4 = vsel %vm845_vm7, %v2243_v3, %v610_v30  ;;  %v850_v41 = vsel %vm845_vm7, %v2246_v40, %v594_v57 }
 0x13a   : > { %v752_v27 = vpop.permute.xlu1 %751  ;;  %v736_v24 = vpop.permute.xlu0 %735 }
 0x13b   : > { %v908_v18 = vsel %vm896_vm10, %v891_v21, %v752_v27  ;;  %v900_v33 = vsel %vm896_vm10, %v883_v15, %v736_v24 }
 0x13c   : > { %925 = vst.msk [vmem:[#allocation2 + $0x58] sm:$0xff] %vm913_vm11, %v908_v18  ;;  %917 = vst.msk [vmem:[#allocation2 + $0x18] sm:$0xff] %vm913_vm11, %v900_v33 }
 0x13e   : > { %v2284_v17 = vpop.permute.xlu1 %423  ;;  %v2286_v11 = vpop.permute.xlu0 %407 }
 0x142   : > { %v470_v31 = vpop.permute.xlu1 %469  ;;  %v454_v54 = vpop.permute.xlu0 %453 }
 0x143   : > { %v2293_v29 = vsel %vm794_vm4, %v792_v52, %v470_v31  ;;  %v2296_v32 = vsel %vm794_vm4, %v784_v35, %v454_v54  ;;  %v933_v45 = vld [vmem:[#allocation2 + $0x18] sm:$0xff] }
 0x144   : > { %v941_v48 = vld [vmem:[#allocation2 + $0x58] sm:$0xff]  ;;  %1371 = vmatmul.mubr.msk.f32.gmra.mrb[2].mxu0 %vm913_vm11, %v933_v45 }
 0x145   : > { %1383 = vmatmul.mubr.msk.f32.gmra.mrb[2].mxu1 %vm913_vm11, %v941_v48  ;;  %v2511_v48 = vld [vmem:[#allocation13_spill] sm:$0xff] }
 0x146   : > { %v612_v42 = vpop.permute.xlu1 %611  ;;  %v596_v12 = vpop.permute.xlu0 %595 }
 0x147   : > { %v859_v55 = vsel %vm845_vm7, %v2263_v25, %v612_v42  ;;  %v851_v49 = vsel %vm845_vm7, %v2266_v13, %v596_v12  ;;  %v793_v42 = vsel %vm777_vm3, %v2511_v48, %v2284_v17 }
 0x14a   : > { %v658_v46 = vpop.permute.xlu1 %657  ;;  %v642_v28 = vpop.permute.xlu0 %641 }
 0x14b   : > { %v875_v8 = vsel %vm862_vm8, %v858_v4, %v658_v46  ;;  %v867_v9 = vsel %vm862_vm8, %v850_v41, %v642_v28  ;;  %v2512_v28 = vld [vmem:[#allocation14_spill] sm:$0xff] }
 0x14e   : > { %v2300_v43 = vpop.permute.xlu1 %471  ;;  %v2302_v44 = vpop.permute.xlu0 %455 }
 0x152   : > { %v518_v47 = vpop.permute.xlu1 %517  ;;  %v502_v0 = vpop.permute.xlu0 %501 }
 0x153   : > { %v826_v26 = vsel %vm811_vm5, %v2293_v29, %v518_v47  ;;  %v818_v31 = vsel %vm811_vm5, %v2296_v32, %v502_v0  ;;  %v810_v29 = vsel %vm794_vm4, %v793_v42, %v2300_v43 }
 0x156   : > { %v660_v6 = vpop.permute.xlu1 %659  ;;  %v644_v36 = vpop.permute.xlu0 %643 }
 0x157   : > { %v876_v53 = vsel %vm862_vm8, %v859_v55, %v660_v6  ;;  %v868_v14 = vsel %vm862_vm8, %v851_v49, %v644_v36  ;;  %v785_v6 = vsel %vm777_vm3, %v2512_v28, %v2286_v11 }
 0x158   : > { %v802_v0 = vsel %vm794_vm4, %v785_v6, %v2302_v44 }
 0x15a   : > { %v706_v51 = vpop.permute.xlu1 %705  ;;  %v690_v56 = vpop.permute.xlu0 %689 }
 0x15b   : > { %v892_v37 = vsel %vm879_vm9, %v875_v8, %v706_v51  ;;  %v884_v50 = vsel %vm879_vm9, %v867_v9, %v690_v56 }
 0x15e   : > { %v2304_v2 = vpop.permute.xlu1 %519  ;;  %v2306_v10 = vpop.permute.xlu0 %503 }
 0x15f   : > { %v827_v17 = vsel %vm811_vm5, %v810_v29, %v2304_v2  ;;  %v819_v11 = vsel %vm811_vm5, %v802_v0, %v2306_v10 }
 0x162   : > { %v566_v63 = vpop.permute.xlu1 %565  ;;  %v550_v1 = vpop.permute.xlu0 %549 }
 0x163   : > { %v843_v54 = vsel %vm828_vm6, %v826_v26, %v566_v63  ;;  %v835_v12 = vsel %vm828_vm6, %v818_v31, %v550_v1 }
 0x166   : > { %v708_v22 = vpop.permute.xlu1 %707 }
 0x167   : > { %v692_v23 = vpop.permute.xlu0 %691  ;;  %v893_v30 = vsel %vm879_vm9, %v876_v53, %v708_v22 }
 0x168   : > { %v885_v58 = vsel %vm879_vm9, %v868_v14, %v692_v23 }
 0x16a   : > { %v754_v39 = vpop.permute.xlu1 %753 }
 0x16b   : > { %v909_v59 = vsel %vm896_vm10, %v892_v37, %v754_v39  ;;  %v738_v60 = vpop.permute.xlu0 %737 }
 0x16c   : > { %926 = vst.msk [vmem:[#allocation2 + $0x60] sm:$0xff] %vm913_vm11, %v909_v59  ;;  %v901_v16 = vsel %vm896_vm10, %v884_v50, %v738_v60 }
 0x16d   : > { %918 = vst.msk [vmem:[#allocation2 + $0x20] sm:$0xff] %vm913_vm11, %v901_v16 }
 0x16e   : > { %v568_v3 = vpop.permute.xlu1 %567 }
 0x16f   : > { %v552_v40 = vpop.permute.xlu0 %551  ;;  %v844_v43 = vsel %vm828_vm6, %v827_v17, %v568_v3 }
 0x170   : > { %v836_v44 = vsel %vm828_vm6, %v819_v11, %v552_v40 }
 0x172   : > { %v614_v5 = vpop.permute.xlu1 %613 }
 0x173   : > { %v598_v7 = vpop.permute.xlu0 %597  ;;  %v942_v34 = vld [vmem:[#allocation2 + $0x60] sm:$0xff]  ;;  %v860_v46 = vsel %vm845_vm7, %v843_v54, %v614_v5 }
 0x174   : > { %v934_v38 = vld [vmem:[#allocation2 + $0x20] sm:$0xff]  ;;  %1385 = vmatprep.mubr.msk.f32.mxu1 %vm913_vm11, %v942_v34  ;;  %v852_v32 = vsel %vm845_vm7, %v835_v12, %v598_v7 }
 0x175   : > { %1373 = vmatprep.mubr.msk.f32.mxu0 %vm913_vm11, %v934_v38  ;;  %v1310_v5 = vld [vmem:[%s2473_s2] ss:$0 sm:$0xff] }
 0x176   : > { %v756_v57 = vpop.permute.xlu1 %755 }
 0x177   : > { %v910_v61 = vsel %vm896_vm10, %v893_v30, %v756_v57  ;;  %v740_v25 = vpop.permute.xlu0 %739 }
 0x178   : > { %927 = vst.msk [vmem:[#allocation2 + $0x68] sm:$0xff] %vm913_vm11, %v910_v61  ;;  %v902_v62 = vsel %vm896_vm10, %v885_v58, %v740_v25 }
 0x179   : > { %919 = vst.msk [vmem:[#allocation2 + $0x28] sm:$0xff] %vm913_vm11, %v902_v62 }
 0x17a   : > { %v616_v13 = vpop.permute.xlu1 %615 }
 0x17b   : > { %v600_v19 = vpop.permute.xlu0 %599  ;;  %v861_v23 = vsel %vm845_vm7, %v844_v43, %v616_v13 }
 0x17c   : > { %v853_v4 = vsel %vm845_vm7, %v836_v44, %v600_v19 }
 0x17e   : > { %v662_v21 = vpop.permute.xlu1 %661 }
 0x17f   : > { %v646_v15 = vpop.permute.xlu0 %645  ;;  %v943_v27 = vld [vmem:[#allocation2 + $0x68] sm:$0xff]  ;;  %v877_v47 = vsel %vm862_vm8, %v860_v46, %v662_v21 }
 0x180   : > { %v935_v24 = vld [vmem:[#allocation2 + $0x28] sm:$0xff]  ;;  %1386 = vmatmul.mubr.msk.f32.gmra.mrb[4].mxu1 %vm913_vm11, %v943_v27  ;;  %v869_v36 = vsel %vm862_vm8, %v852_v32, %v646_v15 }
 0x181   : > { %1374 = vmatmul.mubr.msk.f32.gmra.mrb[4].mxu0 %vm913_vm11, %v935_v24 }
 0x182   : > { %v664_v18 = vpop.permute.xlu1 %663 }
 0x183   : > { %v648_v33 = vpop.permute.xlu0 %647  ;;  %v878_v41 = vsel %vm862_vm8, %v861_v23, %v664_v18 }
 0x184   : > { %v870_v10 = vsel %vm862_vm8, %v853_v4, %v648_v33 }
 0x186   : > { %v710_v20 = vpop.permute.xlu1 %709 }
 0x187   : > { %v694_v52 = vpop.permute.xlu0 %693  ;;  %v894_v51 = vsel %vm879_vm9, %v877_v47, %v710_v20 }
 0x188   : > { %v886_v63 = vsel %vm879_vm9, %v869_v36, %v694_v52 }
 0x18a   : > { %v712_v35 = vpop.permute.xlu1 %711 }
 0x18b   : > { %v696_v45 = vpop.permute.xlu0 %695  ;;  %v895_v8 = vsel %vm879_vm9, %v878_v41, %v712_v35 }
 0x18c   : > { %v887_v37 = vsel %vm879_vm9, %v870_v10, %v696_v45 }
 0x18e   : > { %v758_v56 = vpop.permute.xlu1 %757 }
 0x18f   : > { %v911_v1 = vsel %vm896_vm10, %v894_v51, %v758_v56  ;;  %v742_v22 = vpop.permute.xlu0 %741 }
 0x190   : > { %928 = vst.msk [vmem:[#allocation2 + $0x70] sm:$0xff] %vm913_vm11, %v911_v1  ;;  %v903_v2 = vsel %vm896_vm10, %v886_v63, %v742_v22 }
 0x191   : > { %920 = vst.msk [vmem:[#allocation2 + $0x30] sm:$0xff] %vm913_vm11, %v903_v2 }
 0x192   : > { %v760_v9 = vpop.permute.xlu1 %759 }
 0x193   : > { %v912_v39 = vsel %vm896_vm10, %v895_v8, %v760_v9  ;;  %v744_v50 = vpop.permute.xlu0 %743 }
 0x194   : > { %929 = vst.msk [vmem:[#allocation2 + $0x78] sm:$0xff] %vm913_vm11, %v912_v39  ;;  %v904_v59 = vsel %vm896_vm10, %v887_v37, %v744_v50 }
 0x195   : > { %921 = vst.msk [vmem:[#allocation2 + $0x38] sm:$0xff] %vm913_vm11, %v904_v59 }
 0x197   : > { %v944_v60 = vld [vmem:[#allocation2 + $0x70] sm:$0xff] }
 0x198   : > { %v936_v16 = vld [vmem:[#allocation2 + $0x30] sm:$0xff]  ;;  %1388 = vmatprep.mubr.msk.f32.mxu1 %vm913_vm11, %v944_v60 }
 0x199   : > { %1376 = vmatprep.mubr.msk.f32.mxu0 %vm913_vm11, %v936_v16 }
 0x19b   : > { %v945_v3 = vld [vmem:[#allocation2 + $0x78] sm:$0xff] }
 0x19c   : > { %v937_v40 = vld [vmem:[#allocation2 + $0x38] sm:$0xff]  ;;  %1389 = vmatmul.mubr.msk.f32.gmra.mrb[6].mxu1 %vm913_vm11, %v945_v3 }
 0x19d   : > { %1377 = vmatmul.mubr.msk.f32.gmra.mrb[6].mxu0 %vm913_vm11, %v937_v40 }
 0x1d7   : > { %v1381_v7 = vpop.f32.mrb[0].mxu1 }
 0x1d8   : > { %v1369_v34 = vpop.f32.mrb[0].mxu0  ;;  %v1123_v55 = vadd.f32 %v1381_v7, %v1310_v5  ;;  %v1117_v38 = vpop.f32.mrb[1].mxu1 }
 0x1d9   : > { %v1083_v49 = vadd.f32 %v1369_v34, %v1310_v5  ;;  %v1077_v53 = vpop.f32.mrb[1].mxu0  ;;  %v1118_v14 = vadd.f32 %v1310_v5, %v1117_v38 }
 0x1da   : > { %1165 = vst [vmem:[%s2388_s4 + $0x48] sm:$0xff] %v1123_v55  ;;  %v1078_v30 = vadd.f32 %v1310_v5, %v1077_v53 }
 0x1db   : > { %1157 = vst [vmem:[%s2388_s4 + $0x8] sm:$0xff] %v1083_v49  ;;  %1164 = vst [vmem:[%s2388_s4 + $0x40] sm:$0xff] %v1118_v14 }
 0x1dc   : > { %1156 = vst [vmem:[%s2388_s4] sm:$0xff] %v1078_v30 }
 0x217   : > { %v1372_v57 = vpop.f32.mrb[2].mxu0 }
 0x218   : > { %v1384_v58 = vpop.f32.mrb[2].mxu1  ;;  %v1093_v61 = vadd.f32 %v1372_v57, %v1310_v5  ;;  %v1087_v62 = vpop.f32.mrb[3].mxu0 }
 0x219   : > { %v1133_v25 = vadd.f32 %v1384_v58, %v1310_v5  ;;  %v1127_v13 = vpop.f32.mrb[3].mxu1  ;;  %v1088_v19 = vadd.f32 %v1310_v5, %v1087_v62 }
 0x21a   : > { %v1128_v21 = vadd.f32 %v1310_v5, %v1127_v13  ;;  %1159 = vst [vmem:[%s2388_s4 + $0x18] sm:$0xff] %v1093_v61 }
 0x21b   : > { %1167 = vst [vmem:[%s2388_s4 + $0x58] sm:$0xff] %v1133_v25  ;;  %1158 = vst [vmem:[%s2388_s4 + $0x10] sm:$0xff] %v1088_v19 }
 0x21c   : > { %1166 = vst [vmem:[%s2388_s4 + $0x50] sm:$0xff] %v1128_v21 }
 0x253   : > { %v1387_v15 = vpop.f32.mrb[4].mxu1 }
 0x254   : > { %v1375_v27 = vpop.f32.mrb[4].mxu0  ;;  %v1143_v24 = vadd.f32 %v1387_v15, %v1310_v5  ;;  %v1137_v18 = vpop.f32.mrb[5].mxu1 }
 0x255   : > { %v1103_v33 = vadd.f32 %v1375_v27, %v1310_v5  ;;  %v1097_v20 = vpop.f32.mrb[5].mxu0  ;;  %v1138_v52 = vadd.f32 %v1310_v5, %v1137_v18 }
 0x256   : > { %1169 = vst [vmem:[%s2388_s4 + $0x68] sm:$0xff] %v1143_v24  ;;  %v1098_v26 = vadd.f32 %v1310_v5, %v1097_v20 }
 0x257   : > { %1161 = vst [vmem:[%s2388_s4 + $0x28] sm:$0xff] %v1103_v33  ;;  %1168 = vst [vmem:[%s2388_s4 + $0x60] sm:$0xff] %v1138_v52 }
 0x258   : > { %1160 = vst [vmem:[%s2388_s4 + $0x20] sm:$0xff] %v1098_v26 }
 0x26f   : > { %v1390_v35 = vpop.f32.mrb[6].mxu1 }
 0x270   : > { %v1378_v31 = vpop.f32.mrb[6].mxu0  ;;  %v1153_v54 = vadd.f32 %v1390_v35, %v1310_v5  ;;  %v1147_v45 = vpop.f32.mrb[7].mxu1 }
 0x271   : > { %v1113_v48 = vadd.f32 %v1378_v31, %v1310_v5  ;;  %v1107_v42 = vpop.f32.mrb[7].mxu0  ;;  %v1148_v12 = vadd.f32 %v1310_v5, %v1147_v45 }
 0x272   : > { %1171 = vst [vmem:[%s2388_s4 + $0x78] sm:$0xff] %v1153_v54  ;;  %v1108_v46 = vadd.f32 %v1310_v5, %v1107_v42 }
 0x273   : > { %1163 = vst [vmem:[%s2388_s4 + $0x38] sm:$0xff] %v1113_v48  ;;  %1170 = vst [vmem:[%s2388_s4 + $0x70] sm:$0xff] %v1148_v12 }
 0x274   : > { %1162 = vst [vmem:[%s2388_s4 + $0x30] sm:$0xff] %v1108_v46 }
 0x275   : > { %1499 = shalt.err (!%p1496_p6)
}
 0x276   : > { %s1500_s10 = scalar_lea.hbm %s2408_s15, 2048  ;;  %s1504_s8 = scalar_lea.hbm %s2474_s3, 8192 }
 0x277   : > { %p1501_p7 = scmp.ne.s32.totalorder %s2408_s15, %s1500_s10  ;;  %p1505_p11 = scmp.lt.u32.totalorder %s2408_s15, %s2474_s3 }
 0x278   : > { %p1506_p12 = scmp.lt.u32.totalorder %s1504_s8, %s1500_s10  ;;  %p1508_p0 = scmp.lt.u32.totalorder %s1500_s10, %s2408_s15 }
 0x279   : > { %p1502_p9 = pnand %p1501_p7, %p1663_p3 }
 0x27a   : > { %p1507_p13 = por %p1506_p12, %p1505_p11 }
 0x27b   : > { %p1503_p10 = pneg %p1502_p9 }
 0x27c   : > { %p1509_p1 = por %p1508_p0, %p1507_p13 }
 0x27e   : > { %p1510_p2 = pnand %p1509_p1, %p1503_p10 }
 0x280   : > { %1513 = shalt.err (!%p1510_p2)
}
 0x281   : > { %s1591_s21 = smov 128  }
 0x282   : > { %1406 = dma.vmem_to_hbm [thread:$0]  (%p1663_p3), %s2411_s29, 2048, %s2408_s15, %s2418_s16, %s1591_s21, %s1591_s21, %s1583_s20  }
 0x283 PF: > { %p1412_p4 = scmp.ge.s32.totalorder %s1580_s19, 2  ;;  %s1205_s28 = sand.u32 1, %s1552_s12  }
 0x284   : > { %s1206_s6 = scalar_lea.sflag [#allocation4], %s1205_s28 }
 0x285   : > { %p1409_p5 = pnand %p1412_p4, %p1672_p8 }
 0x287   : > { %1547 = dma.done.wait (!%p1409_p5), %s1206_s6, 2048  }
 0x288   : > { %1549 = vsyncadd (!%p1409_p5), %s1206_s6, 4294965248  ;;  %s16_s19 = sadd.s32 1, %s1580_s19   ;;  %s2513_s12 = smov %s1556_s13 }
 0x289   : > { %p13_p6 = scmp.ge.s32.totalorder %s16_s19, 6   ;;  %s2514_s13 = smov %s1560_s14 }
 0x28a   : > { %s2515_s14 = smov %s1681_s30  ;;  %s2516_s15 = smov %s1572_s17 }
 0x28b   : > { %s2517_s16 = smov %s1576_s18  ;;  %s2518_s17 = smov %s2521_s22 }
 0x28c   : > { %s2519_s18 = smov %s2525_s23  ;;  %15 = sbr.rel (!%p13_p6) target bundleno = 5 (0x5), region = 78 }
 0x293   :  { %1211 = vsyncpa [#allocation4], 1 }
 0x294   :  { %1213 = vsyncpa [#allocation4 + $0x1], 1 }

</bundles_post_ra>
